<compile_context>
chip_gen: v6e
topology: v6e:2x2x1
jax: 0.10.0
libtpu: 0.0.40
codegen_flags: <defaults>
</compile_context>

<pallas_src>
import functools

import jax
import jax.numpy as jnp
from jax.experimental import pallas as pl
from jax.experimental.pallas import tpu as pltpu


def _round_up(x, m):
    return ((x + m - 1) // m) * m


# ----------------------------------------------------------------------------
# Bandwidth kernel (fix_sigma=None path): analytic, O(N*D), no L2 matrix.
#   sum_{i,j} ||x_i - x_j||^2 = 2*n * sum_i ||x_i - mean||^2
# ----------------------------------------------------------------------------
def _bandwidth_kernel(src_ref, tgt_ref, out_ref, *, kernel_mul, kernel_num):
    src = src_ref[...].astype(jnp.float32)          # (Bs, D)
    tgt = tgt_ref[...].astype(jnp.float32)          # (Bt, D)
    bs, bt = src.shape[0], tgt.shape[0]
    n = float(bs + bt)

    colsum = (jnp.sum(src, axis=0, keepdims=True)
              + jnp.sum(tgt, axis=0, keepdims=True))          # (1, D)
    mean = colsum * (1.0 / n)
    ds = src - mean
    dt = tgt - mean
    centred_sq = jnp.sum(ds * ds) + jnp.sum(dt * dt)          # sum_i ||x_i - mean||^2
    sum_l2 = 2.0 * n * centred_sq

    bandwidth = sum_l2 / (n * n - n)
    bandwidth = bandwidth / (kernel_mul ** (kernel_num // 2))
    out_ref[0, 0] = bandwidth


# ----------------------------------------------------------------------------
# Tiled quadrant kernel: sum over the multi-bandwidth Gaussian kernel values
# between rows of A and rows of B.  Grid = (row tiles, col tiles); per-row-tile
# partial sums are emitted (indexed by the "parallel" row-tile axis).
# ----------------------------------------------------------------------------
def _rbf_quadrant_kernel(bw_ref, a_ref, b_ref, out_ref, acc_ref, *,
                         kernel_mul, kernel_num, rows_valid, cols_valid,
                         symmetric, needs_mask):
    i = pl.program_id(0)
    j = pl.program_id(1)
    nj = pl.num_programs(1)

    @pl.when(j == 0)
    def _():
        acc_ref[0] = jnp.float32(0.0)

    def tile_contrib():
        a = a_ref[...]                                         # (tm, D)
        b = b_ref[...]                                         # (tn, D)
        tm, tn = a.shape[0], b.shape[0]

        a32 = a.astype(jnp.float32)
        b32 = b.astype(jnp.float32)
        sq_a = jnp.sum(a32 * a32, axis=1, keepdims=True)       # (tm, 1)
        sq_b = jnp.sum(b32 * b32, axis=1, keepdims=True)       # (tn, 1)

        # Gram tile: contract the feature axis of BOTH operands (no explicit
        # transpose before the MXU); f32 accumulation.
        dn = (((1,), (1,)), ((), ()))
        g = jax.lax.dot_general(a, b, dimension_numbers=dn,
                                preferred_element_type=jnp.float32)  # (tm, tn)
        l2 = jnp.maximum(sq_a + sq_b.T - 2.0 * g, 0.0)

        bw = bw_ref[0, 0]
        if kernel_mul == 2.0:
            # One EUP exp at the LARGEST bandwidth, remaining bandwidths via
            # repeated squaring on the VPU: exp(-L2/(bw/2)) == exp(-L2/bw)^2.
            bw_max = bw * (kernel_mul ** (kernel_num - 1))
            e = jnp.exp(l2 * (-1.0 / bw_max))
            k_acc = e
            for _ in range(kernel_num - 1):
                e = e * e
                k_acc = k_acc + e
        else:
            # Generic fallback: one exp per bandwidth, still a single reduce.
            k_acc = jnp.zeros_like(l2)
            for p in range(kernel_num):
                k_acc = k_acc + jnp.exp(l2 * (-1.0 / (bw * (kernel_mul ** p))))

        if needs_mask:
            row_ids = jax.lax.broadcasted_iota(jnp.int32, (tm, tn), 0) + i * tm
            col_ids = jax.lax.broadcasted_iota(jnp.int32, (tm, tn), 1) + j * tn
            valid = (row_ids < rows_valid) & (col_ids < cols_valid)
            k_acc = jnp.where(valid, k_acc, 0.0)

        tile_sum = jnp.sum(k_acc)               # ONE full reduction per tile
        if symmetric:
            # Tiles with j > i stand in for their mirrored (i > j) twins.
            tile_sum = tile_sum * jnp.where(j > i, 2.0, 1.0)
        acc_ref[0] += tile_sum

    if symmetric:
        pl.when(j >= i)(tile_contrib)           # skip lower-triangular tiles
    else:
        tile_contrib()

    @pl.when(j == nj - 1)
    def _():
        # Lane-dense unmasked store of the per-row-tile partial.
        out_ref[...] = jnp.full(out_ref.shape, acc_ref[0], dtype=jnp.float32)


def _rbf_quadrant_sum(bw, a, b, *, symmetric, kernel_mul, kernel_num,
                      block_rows):
    """Sum of multi-bandwidth Gaussian kernel values between rows of a and b."""
    if symmetric:
        assert a.shape == b.shape
    ma, d = a.shape
    mb = b.shape[0]

    tm = min(block_rows, _round_up(ma, 8))
    tn = min(block_rows, _round_up(mb, 8))
    ma_pad = _round_up(ma, tm)
    mb_pad = _round_up(mb, tn)
    if ma_pad != ma:
        a = jnp.pad(a, ((0, ma_pad - ma), (0, 0)))
    if mb_pad != mb:
        b = jnp.pad(b, ((0, mb_pad - mb), (0, 0)))
    ni = ma_pad // tm
    nj = mb_pad // tn
    needs_mask = (ma_pad != ma) or (mb_pad != mb)

    kernel = functools.partial(
        _rbf_quadrant_kernel,
        kernel_mul=kernel_mul, kernel_num=kernel_num,
        rows_valid=ma, cols_valid=mb,
        symmetric=symmetric, needs_mask=needs_mask)

    partials = pl.pallas_call(
        kernel,
        out_shape=jax.ShapeDtypeStruct((ni, 8, 128), jnp.float32),
        grid=(ni, nj),
        in_specs=[
            pl.BlockSpec(memory_space=pltpu.MemorySpace.SMEM),      # bandwidth (1,1)
            pl.BlockSpec((tm, d), lambda i, j: (i, 0)),             # row tile (reused over j)
            pl.BlockSpec((tn, d), lambda i, j: (j, 0)),             # col tile
        ],
        out_specs=pl.BlockSpec((1, 8, 128), lambda i, j: (i, 0, 0)),
        scratch_shapes=[pltpu.SMEM((1,), jnp.float32)],
        compiler_params=pltpu.CompilerParams(
            dimension_semantics=("parallel", "arbitrary")),
    )(bw, a, b)

    return jnp.sum(partials[:, 0, 0])


# ----------------------------------------------------------------------------
# Linear MMD kernel (linear_mmd2)
# ----------------------------------------------------------------------------
def _mmd_linear_kernel(src_ref, tgt_ref, out_ref):
    src = src_ref[...].astype(jnp.float32)                       # (Bs, D)
    tgt = tgt_ref[...].astype(jnp.float32)                       # (Bt, D)
    delta = (jnp.mean(src, axis=0, keepdims=True)
             - jnp.mean(tgt, axis=0, keepdims=True))             # (1, D)
    out_ref[0, 0] = jnp.sum(delta * delta)


# ----------------------------------------------------------------------------
# Wrapper mirroring MMD_loss.forward
# ----------------------------------------------------------------------------
def mmd_loss(source, target, kernel_type="rbf", kernel_mul=2.0, kernel_num=5,
             block_rows=256):
    source = jnp.asarray(source)
    target = jnp.asarray(target)

    if kernel_type == "linear":
        out = pl.pallas_call(
            _mmd_linear_kernel,
            out_shape=jax.ShapeDtypeStruct((1, 1), jnp.float32),
            in_specs=[
                pl.BlockSpec(source.shape, lambda: (0, 0)),
                pl.BlockSpec(target.shape, lambda: (0, 0)),
            ],
            out_specs=pl.BlockSpec(memory_space=pltpu.MemorySpace.SMEM),
        )(source, target)
        return out[0, 0]

    elif kernel_type == "rbf":
        kernel_mul = float(kernel_mul)
        kernel_num = int(kernel_num)
        bs = source.shape[0]
        bt = target.shape[0]

        # Pass 1 (analytic, O(N*D)): data-dependent bandwidth (fix_sigma=None).
        bw_kernel = functools.partial(
            _bandwidth_kernel, kernel_mul=kernel_mul, kernel_num=kernel_num)
        bw = pl.pallas_call(
            bw_kernel,
            out_shape=jax.ShapeDtypeStruct((1, 1), jnp.float32),
            in_specs=[
                pl.BlockSpec(source.shape, lambda: (0, 0)),
                pl.BlockSpec(target.shape, lambda: (0, 0)),
            ],
            out_specs=pl.BlockSpec(memory_space=pltpu.MemorySpace.SMEM),
        )(source, target)

        # Pass 2: tiled quadrant sums (SS, TT symmetric; ST once, YX == XY).
        qsum = functools.partial(_rbf_quadrant_sum, kernel_mul=kernel_mul,
                                 kernel_num=kernel_num, block_rows=block_rows)
        a_ss = qsum(bw, source, source, symmetric=True)
        a_tt = qsum(bw, target, target, symmetric=True)
        a_st = qsum(bw, source, target, symmetric=False)

        # loss = mean(XX) + mean(YY) - mean(XY) - mean(YX)
        loss = (a_ss * (1.0 / float(bs * bs))
                + a_tt * (1.0 / float(bt * bt))
                - 2.0 * a_st * (1.0 / float(bs * bt)))
        return loss

    else:
        raise ValueError(f"unknown kernel_type: {kernel_type}")


# ----------------------------------------------------------------------------
# Pure-JAX reference (mirrors the PyTorch module) for sanity checks.
# ----------------------------------------------------------------------------
def _mmd_rbf_ref(source, target, kernel_mul=2.0, kernel_num=5):
    source = source.astype(jnp.float32)
    target = target.astype(jnp.float32)
    b = source.shape[0]
    total = jnp.concatenate([source, target], axis=0)
    n = total.shape[0]
    diff = total[None, :, :] - total[:, None, :]
    l2 = jnp.sum(diff * diff, axis=2)
    bandwidth = jnp.sum(l2) / (n * n - n)
    bandwidth = bandwidth / (kernel_mul ** (kernel_num // 2))
    kernels = sum(jnp.exp(-l2 / (bandwidth * kernel_mul ** i))
                  for i in range(kernel_num))
    xx = jnp.mean(kernels[:b, :b])
    yy = jnp.mean(kernels[b:, b:])
    xy = jnp.mean(kernels[:b, b:])
    yx = jnp.mean(kernels[b:, :b])
    return xx + yy - xy - yx


if __name__ == "__main__":
    key = jax.random.PRNGKey(0)
    k_src, k_tgt, k_src2, k_tgt2 = jax.random.split(key, 4)

    # ---- Test 1: single-tile path (default block_rows), equal batches ----
    bs, bt, feat = 16, 16, 32
    source = jax.random.normal(k_src, (bs, feat), dtype=jnp.float32)
    target = jax.random.normal(k_tgt, (bt, feat), dtype=jnp.float32) + 0.5

    loss_rbf = jax.block_until_ready(
        mmd_loss(source, target, kernel_type="rbf", kernel_mul=2.0, kernel_num=5))
    ref_rbf = _mmd_rbf_ref(source, target, kernel_mul=2.0, kernel_num=5)
    assert jnp.allclose(loss_rbf, ref_rbf, rtol=2e-3, atol=1e-5), (loss_rbf, ref_rbf)

    # ---- Test 2: multi-tile grid, padding/masking, symmetry, uneven batches ----
    bs2, bt2 = 20, 12
    source2 = jax.random.normal(k_src2, (bs2, feat), dtype=jnp.float32)
    target2 = jax.random.normal(k_tgt2, (bt2, feat), dtype=jnp.float32) - 0.3

    loss_rbf2 = jax.block_until_ready(
        mmd_loss(source2, target2, kernel_type="rbf", kernel_mul=2.0,
                 kernel_num=5, block_rows=8))
    ref_rbf2 = _mmd_rbf_ref(source2, target2, kernel_mul=2.0, kernel_num=5)
    assert jnp.allclose(loss_rbf2, ref_rbf2, rtol=2e-3, atol=1e-5), (loss_rbf2, ref_rbf2)

    # ---- Test 3: generic kernel_mul != 2 fallback path ----
    loss_rbf3 = jax.block_until_ready(
        mmd_loss(source2, target2, kernel_type="rbf", kernel_mul=3.0,
                 kernel_num=3, block_rows=8))
    ref_rbf3 = _mmd_rbf_ref(source2, target2, kernel_mul=3.0, kernel_num=3)
    assert jnp.allclose(loss_rbf3, ref_rbf3, rtol=2e-3, atol=1e-5), (loss_rbf3, ref_rbf3)

    # ---- Test 4: linear path ----
    loss_lin = jax.block_until_ready(mmd_loss(source, target, kernel_type="linear"))
    delta_ref = jnp.mean(source, axis=0) - jnp.mean(target, axis=0)
    ref_lin = jnp.dot(delta_ref, delta_ref)
    assert jnp.allclose(loss_lin, ref_lin, rtol=1e-5, atol=1e-6), (loss_lin, ref_lin)

    print("KERNEL_OK")
</pallas_src>

<mosaic_0001>
module attributes {stable_mosaic.version = 11 : i64} {
  func.func @_bandwidth_kernel(%arg0: memref<16x32xf32, #tpu.memory_space<vmem>>, %arg1: memref<16x32xf32, #tpu.memory_space<vmem>>, %arg2: memref<1x1xf32, #tpu.memory_space<smem>>) attributes {dimension_semantics = [], scalar_prefetch = 0 : i64, scratch_operands = 0 : i64, tpu.core_type = #tpu.core_type<tc>} {
    %c0 = arith.constant 0 : index
    %c0_0 = arith.constant 0 : index
    %0 = vector.load %arg0[%c0, %c0_0] : memref<16x32xf32, #tpu.memory_space<vmem>>, vector<16x32xf32>
    %c0_1 = arith.constant 0 : index
    %c0_2 = arith.constant 0 : index
    %1 = vector.load %arg1[%c0_1, %c0_2] : memref<16x32xf32, #tpu.memory_space<vmem>>, vector<16x32xf32>
    %cst = arith.constant dense<0.000000e+00> : vector<32xf32>
    %2 = vector.multi_reduction <add>, %0, %cst [0] : vector<16x32xf32> to vector<32xf32>
    %3 = vector.shape_cast %2 : vector<32xf32> to vector<1x32xf32>
    %cst_3 = arith.constant dense<0.000000e+00> : vector<32xf32>
    %4 = vector.multi_reduction <add>, %1, %cst_3 [0] : vector<16x32xf32> to vector<32xf32>
    %5 = vector.shape_cast %4 : vector<32xf32> to vector<1x32xf32>
    %6 = arith.addf %3, %5 : vector<1x32xf32>
    %cst_4 = arith.constant 3.125000e-02 : f32
    %7 = vector.broadcast %cst_4 : f32 to vector<1x32xf32>
    %8 = arith.mulf %6, %7 : vector<1x32xf32>
    %9 = vector.broadcast %8 : vector<1x32xf32> to vector<16x32xf32>
    %10 = arith.subf %0, %9 : vector<16x32xf32>
    %11 = vector.broadcast %8 : vector<1x32xf32> to vector<16x32xf32>
    %12 = arith.subf %1, %11 : vector<16x32xf32>
    %13 = arith.mulf %10, %10 : vector<16x32xf32>
    %14 = vector.shape_cast %13 : vector<16x32xf32> to vector<1x16x32xf32>
    %cst_5 = arith.constant dense<0.000000e+00> : vector<1xf32>
    %15 = vector.multi_reduction <add>, %14, %cst_5 [1, 2] : vector<1x16x32xf32> to vector<1xf32>
    %16 = vector.shape_cast %15 : vector<1xf32> to vector<1x1x1xf32>
    %17 = vector.extract %16[0, 0, 0] : f32 from vector<1x1x1xf32>
    %18 = arith.mulf %12, %12 : vector<16x32xf32>
    %19 = vector.shape_cast %18 : vector<16x32xf32> to vector<1x16x32xf32>
    %cst_6 = arith.constant dense<0.000000e+00> : vector<1xf32>
    %20 = vector.multi_reduction <add>, %19, %cst_6 [1, 2] : vector<1x16x32xf32> to vector<1xf32>
    %21 = vector.shape_cast %20 : vector<1xf32> to vector<1x1x1xf32>
    %22 = vector.extract %21[0, 0, 0] : f32 from vector<1x1x1xf32>
    %23 = arith.addf %17, %22 : f32
    %cst_7 = arith.constant 6.400000e+01 : f32
    %24 = arith.mulf %cst_7, %23 : f32
    %cst_8 = arith.constant 9.920000e+02 : f32
    %25 = arith.divf %24, %cst_8 : f32
    %cst_9 = arith.constant 4.000000e+00 : f32
    %26 = arith.divf %25, %cst_9 : f32
    %c0_10 = arith.constant 0 : index
    %c0_11 = arith.constant 0 : index
    %27 = memref.load %arg2[%c0_10, %c0_11] : memref<1x1xf32, #tpu.memory_space<smem>>
    memref.store %26, %arg2[%c0_10, %c0_11] : memref<1x1xf32, #tpu.memory_space<smem>>
    return
  }
}

</mosaic_0001>

<bundles_post_ra>
// kernel: tpu_custom_call.1
= control target key start
LH: loop header
LB: loop body
LE: loop exit
PB: predicated region body
PF: predicated region fallthrough
CT: control target
= control target key end

     0   :  { %7 = vsyncpa [#allocation3], 0  ;;  %s222_s0 = inlined_call_operand.hbm [shape: f32[16,32], index: 0, kind: input, shape index: {}]   ;;  %s223_s1 = inlined_call_operand.hbm [shape: f32[16,32], index: 1, kind: input, shape index: {}]   ;;  %s224_s2 = inlined_call_operand.hbm [shape: f32[1,1], index: 2, kind: output, shape index: {}]  }
   0x1   :  { %8 = vsyncpa [#allocation6], 0 }
   0x2   :  { %9 = vsyncpa [#allocation4], 0  ;;  %s185_s9 = smov [#allocation2]  }
   0x3   :  { %s15_s10 = sshll.u32 %s185_s9, 4  ;;  %s16_s10 = int_to_ptr.vmem [resolvable:$true] %s15_s10 }
   0x4   :  { %s139_s11 = scalar_lea.vmem %s16_s10, 256  ;;  %p144_p1 = scmp.lt.s32.totalorder %s16_s10, %s16_s10 }
   0x5   :  { %p140_p0 = scmp.ne.s32.totalorder %s16_s10, %s139_s11  ;;  %p145_p2 = scmp.lt.s32.totalorder %s139_s11, %s139_s11 }
   0x7   :  { %p146_p3 = por %p145_p2, %p144_p1 }
   0x9   :  { %p147_p4 = pnand %p146_p3, %p140_p0 }
   0xb   :  { %150 = shalt.err (!%p147_p4)
}
   0xc   :  { %s186_s12 = smov 128   ;;  %s187_s13 = smov 8  }
   0xd   :  { %21 = dma.hbm_to_vmem [thread:$0]  %s222_s0, 256, %s16_s10, [#allocation3], %s186_s12, %s186_s12, %s187_s13  }
   0xe   :  { %s188_s16 = smov [#allocation5]  }
   0xf   :  { %s27_s17 = sshll.u32 %s188_s16, 4  ;;  %s28_s17 = int_to_ptr.vmem [resolvable:$true] %s27_s17 }
  0x10   :  { %s159_s18 = scalar_lea.vmem %s28_s17, 256  ;;  %p164_p6 = scmp.lt.s32.totalorder %s28_s17, %s28_s17 }
  0x11   :  { %p160_p5 = scmp.ne.s32.totalorder %s28_s17, %s159_s18  ;;  %p165_p7 = scmp.lt.s32.totalorder %s159_s18, %s159_s18 }
  0x13   :  { %p166_p8 = por %p165_p7, %p164_p6 }
  0x15   :  { %p167_p9 = pnand %p166_p8, %p160_p5 }
  0x17   :  { %170 = shalt.err (!%p167_p9)
}
  0x18   :  { %33 = dma.hbm_to_vmem [thread:$0]  %s223_s1, 256, %s28_s17, [#allocation6], %s186_s12, %s186_s12, %s187_s13  }
  0x19   :  { %179 = dma.done.wait [#allocation3], 256  }
  0x1a   :  { %180 = vsyncadd [#allocation3], 4294967040 }
  0x1b   :  { %181 = dma.done.wait [#allocation6], 256  }
  0x1c   :  { %182 = vsyncadd [#allocation6], 4294967040  ;;  %vm44_vm0 = vcmask 261120   ;;  %v40_v0 = vld [vmem:[#allocation2] sm:$0xff]  ;;  %v41_v1 = vld [vmem:[#allocation2 + $0x8] sm:$0xff]  ;;  %s189_s25 = smov [#allocation7]  }
  0x1d   :  { %v42_v2 = vld [vmem:[#allocation5] sm:$0xff]  ;;  %v43_v3 = vld [vmem:[#allocation5 + $0x8] sm:$0xff]  ;;  %v45_v4 = vsel %vm44_vm0, %v40_v0, 0.0  ;;  %v46_v5 = vsel %vm44_vm0, %v41_v1, 0.0 }
  0x1e   :  { %v54_v6 = vsel %vm44_vm0, %v42_v2, 0.0  ;;  %v47_v7 = vadd.f32 %v46_v5, %v45_v4  ;;  %v55_v8 = vsel %vm44_vm0, %v43_v3, 0.0 }
  0x1f   :  { %v56_v9 = vadd.f32 %v55_v8, %v54_v6 }
  0x20   :  { %v48_v10 = vrot.slane %v47_v7, 4 }
  0x21   :  { %v57_v11 = vrot.slane %v56_v9, 4 }
  0x22   :  { %v49_v12 = vadd.f32 %v48_v10, %v47_v7 }
  0x23   :  { %v58_v13 = vadd.f32 %v57_v11, %v56_v9 }
  0x24   :  { %v50_v14 = vrot.slane %v49_v12, 2 }
  0x25   :  { %v59_v15 = vrot.slane %v58_v13, 2 }
  0x26   :  { %v51_v16 = vadd.f32 %v50_v14, %v49_v12 }
  0x27   :  { %v60_v17 = vadd.f32 %v59_v15, %v58_v13 }
  0x28   :  { %v52_v18 = vrot.slane %v51_v16, 1 }
  0x29   :  { %v61_v19 = vrot.slane %v60_v17, 1 }
  0x2a   :  { %v53_v20 = vadd.f32 %v52_v18, %v51_v16 }
  0x2b   :  { %v62_v21 = vadd.f32 %v61_v19, %v60_v17 }
  0x2d   :  { %v63_v22 = vadd.f32 %v62_v21, %v53_v20 }
  0x2f   :  { %v64_v23 = vmul.f32 0.03125, %v63_v22 }
  0x31   :  { %v65_v24 = vsub.f32 %v40_v0, %v64_v23  ;;  %v66_v25 = vsub.f32 %v41_v1, %v64_v23  ;;  %v67_v26 = vsub.f32 %v42_v2, %v64_v23  ;;  %v68_v27 = vsub.f32 %v43_v3, %v64_v23 }
  0x33   :  { %v69_v28 = vmul.f32 %v65_v24, %v65_v24  ;;  %v70_v29 = vmul.f32 %v66_v25, %v66_v25  ;;  %v83_v30 = vmul.f32 %v67_v26, %v67_v26  ;;  %v84_v31 = vmul.f32 %v68_v27, %v68_v27 }
  0x35   :  { %v71_v32 = vsel %vm44_vm0, %v69_v28, 0.0  ;;  %v72_v33 = vsel %vm44_vm0, %v70_v29, 0.0  ;;  %v85_v34 = vsel %vm44_vm0, %v83_v30, 0.0  ;;  %v86_v35 = vsel %vm44_vm0, %v84_v31, 0.0 }
  0x36   :  { %v73_v36 = vadd.f32 %v72_v33, %v71_v32  ;;  %v87_v37 = vadd.f32 %v86_v35, %v85_v34 }
  0x38   :  { %74 = vadd.xlane.f32.xlu0 %v73_v36 }
  0x3c   :  { %88 = vadd.xlane.f32.xlu0 %v87_v37 }
  0xc1   :  { %v75_v38 = vpop.xlane.xlu0 %74 }
  0xc2   :  { %v76_v39 = vrot.slane %v75_v38, 4 }
  0xc4   :  { %v77_v40 = vadd.f32 %v76_v39, %v75_v38 }
  0xc5   :  { %v89_v41 = vpop.xlane.xlu0 %88 }
  0xc6   :  { %v78_v42 = vrot.slane %v77_v40, 2  ;;  %v90_v43 = vrot.slane %v89_v41, 4 }
  0xc8   :  { %v91_v44 = vadd.f32 %v90_v43, %v89_v41  ;;  %v79_v45 = vadd.f32 %v78_v42, %v77_v40 }
  0xca   :  { %v92_v46 = vrot.slane %v91_v44, 2  ;;  %v80_v47 = vrot.slane %v79_v45, 1 }
  0xcc   :  { %v93_v48 = vadd.f32 %v92_v46, %v91_v44  ;;  %v81_v49 = vadd.f32 %v80_v47, %v79_v45 }
  0xce   :  { %122 = vpush %v81_v49  ;;  %v94_v50 = vrot.slane %v93_v48, 1 }
  0xd0   :  { %v95_v51 = vadd.f32 %v94_v50, %v93_v48 }
  0xd2   :  { %124 = vpush %v95_v51 }
  0xff   :  { %s123_s0 = spop %122 }
 0x103   :  { %s125_s1 = spop %124 }
 0x104   :  { %s97_s21 = sadd.f32 %s125_s1, %s123_s0 }
 0x106   :  { %s98_s22 = smul.f32 64.0, %s97_s21 }
 0x108   :  { %s101_s23 = smul.f32 0.0010080645, %s98_s22 }
 0x10a   :  { %s104_s24 = smul.f32 0.25, %s101_s23 }
 0x10c   :  { %106 = sst [smem:[#allocation7]] %s104_s24 }
 0x10d   :  { %114 = dma.smem_to_hbm %s189_s25, 16, %s224_s2, [#allocation4]  }
 0x10e   :  { %183 = dma.done.wait [#allocation4], 16  }
 0x10f   :  { %184 = vsyncadd [#allocation4], 4294967280 }
 0x110   :  { %118 = sfence }
 0x111   :  { %119 = vsyncpa [#allocation3], 1 }
 0x112   :  { %120 = vsyncpa [#allocation6], 1 }
 0x113   :  { %121 = vsyncpa [#allocation4], 1 }

</bundles_post_ra>
